<compile_context>
chip_gen: v6e
topology: v6e:2x2x1
jax: 0.10.0
libtpu: 0.0.40
codegen_flags: <defaults>
</compile_context>

<pallas_src>
import functools

import jax
import jax.numpy as jnp
from jax import lax
from jax.experimental import pallas as pl
from jax.experimental.pallas import tpu as pltpu

_LANE = 128
_SUBLANE = 8
_TILE_TARGET_BYTES = 4 * 1024 * 1024    # ~4 MiB per-input tile in the tiled path
_SMALL_PADDED_BYTES = 2 * 1024 * 1024   # fast-path gate: <=2 MiB padded f32 per input
_VMEM_LIMIT_BYTES = 48 * 1024 * 1024    # > v5e 16 MiB default scoped, < v7x 64 MiB physical


def _round_up(x, m):
    return ((x + m - 1) // m) * m


# ---------------------------------------------------------------------------
# Small-input fast path: whole problem in one block, scalar result in SMEM.
# ---------------------------------------------------------------------------
def _mse_small_kernel(a_ref, p_ref, o_ref, *, n, reduction):
    d = a_ref[...].astype(jnp.float32) - p_ref[...].astype(jnp.float32)
    total = jnp.sum(d * d)
    if reduction == "mean":
        total = total / jnp.float32(n)
    o_ref[0, 0] = total


def _sq_diff_small_kernel(a_ref, p_ref, o_ref):
    d = a_ref[...].astype(jnp.float32) - p_ref[...].astype(jnp.float32)
    o_ref[...] = (d * d).astype(o_ref.dtype)


# ---------------------------------------------------------------------------
# Tiled reduction kernel: grid = (split, blocks_per_split) over a (rows, 128)
# view.  Accumulates into an (8, 128) f32 vreg-shaped scratch via a chunked
# fori_loop (one (8,128) slice per step, VPU-only).  Ragged / phantom blocks
# are masked against the true row count; each split writes its own partials.
# ---------------------------------------------------------------------------
def _mse_sum_tiled_kernel(a_ref, p_ref, out_ref, acc_ref, *,
                          block_rows, total_rows, blocks_per_split):
    s = pl.program_id(0)
    i = pl.program_id(1)

    @pl.when(i == 0)
    def _():
        acc_ref[...] = jnp.zeros_like(acc_ref)

    row0 = (s * blocks_per_split + i) * block_rows      # global start row of block
    n_chunks = block_rows // _SUBLANE

    def _diff(k):
        off = pl.multiple_of(k * _SUBLANE, _SUBLANE)
        a = a_ref[pl.ds(off, _SUBLANE), :].astype(jnp.float32)
        p = p_ref[pl.ds(off, _SUBLANE), :].astype(jnp.float32)
        return off, a - p

    def full_body(k, acc):
        _, d = _diff(k)
        return acc + d * d

    sub_iota = lax.broadcasted_iota(jnp.int32, (_SUBLANE, _LANE), 0)

    def masked_body(k, acc):
        off, d = _diff(k)
        valid = (row0 + off + sub_iota) < total_rows
        return acc + jnp.where(valid, d * d, 0.0)

    block_full = (row0 + block_rows) <= total_rows

    @pl.when(block_full)
    def _():
        acc_ref[...] = lax.fori_loop(0, n_chunks, full_body, acc_ref[...], unroll=8)

    @pl.when(jnp.logical_not(block_full))
    def _():
        acc_ref[...] = lax.fori_loop(0, n_chunks, masked_body, acc_ref[...], unroll=8)

    @pl.when(i == pl.num_programs(1) - 1)
    def _():
        out_ref[...] = acc_ref[...]


# ---------------------------------------------------------------------------
# Tiled elementwise kernel (reduction='none'): chunked so no full-tile f32
# intermediate is materialized in VMEM.
# ---------------------------------------------------------------------------
def _sq_diff_tiled_kernel(a_ref, p_ref, out_ref, *, block_rows):
    n_chunks = block_rows // _SUBLANE

    def body(k, carry):
        off = pl.multiple_of(k * _SUBLANE, _SUBLANE)
        d = (a_ref[pl.ds(off, _SUBLANE), :].astype(jnp.float32)
             - p_ref[pl.ds(off, _SUBLANE), :].astype(jnp.float32))
        out_ref[pl.ds(off, _SUBLANE), :] = (d * d).astype(out_ref.dtype)
        return carry

    lax.fori_loop(0, n_chunks, body, 0, unroll=8)


def _pick_block_rows(rows, itemsize):
    target = (_TILE_TARGET_BYTES // (_LANE * itemsize)) // _SUBLANE * _SUBLANE
    target = max(_SUBLANE, target)
    need = _round_up(rows, _SUBLANE)
    return max(_SUBLANE, min(target, need))


def gan_loss(actual, pred, reduction="mean"):
    if actual.shape != pred.shape or reduction not in ("mean", "sum", "none"):
        raise Exception("Unable to process the input".capitalize())

    n = actual.size
    out_dtype = jnp.promote_types(actual.dtype, pred.dtype)

    if n == 0:
        if reduction == "mean":
            return jnp.array(jnp.nan, jnp.float32)   # torch: mean over empty -> nan
        if reduction == "sum":
            return jnp.zeros((), jnp.float32)
        return jnp.zeros(actual.shape, out_dtype)

    itemsize = max(jnp.dtype(actual.dtype).itemsize, jnp.dtype(pred.dtype).itemsize)

    # 2-D view keeping the original minor dim (tiny / near-free for the fast
    # path; the tiled path below builds its own lane-dense (rows, 128) view).
    last = actual.shape[-1] if actual.ndim >= 1 else 1
    lead = n // last
    padded_bytes = _round_up(lead, _SUBLANE) * _round_up(last, _LANE) * 4

    # ------------------- small-input fast path (single block) ---------------
    if padded_bytes <= _SMALL_PADDED_BYTES:
        a2 = actual.reshape(lead, last)
        p2 = pred.reshape(lead, last)
        if reduction == "none":
            sq = pl.pallas_call(
                _sq_diff_small_kernel,
                out_shape=jax.ShapeDtypeStruct((lead, last), out_dtype),
                in_specs=[pl.BlockSpec(memory_space=pltpu.MemorySpace.VMEM)] * 2,
                out_specs=pl.BlockSpec(memory_space=pltpu.MemorySpace.VMEM),
                compiler_params=pltpu.CompilerParams(vmem_limit_bytes=_VMEM_LIMIT_BYTES),
                cost_estimate=pl.CostEstimate(
                    flops=2 * n, transcendentals=0,
                    bytes_accessed=2 * n * itemsize + n * jnp.dtype(out_dtype).itemsize),
            )(a2, p2)
            return sq.reshape(actual.shape)

        res = pl.pallas_call(
            functools.partial(_mse_small_kernel, n=n, reduction=reduction),
            out_shape=jax.ShapeDtypeStruct((1, 1), jnp.float32),
            in_specs=[pl.BlockSpec(memory_space=pltpu.MemorySpace.VMEM)] * 2,
            out_specs=pl.BlockSpec(memory_space=pltpu.MemorySpace.SMEM),
            compiler_params=pltpu.CompilerParams(vmem_limit_bytes=_VMEM_LIMIT_BYTES),
            cost_estimate=pl.CostEstimate(
                flops=3 * n, transcendentals=0, bytes_accessed=2 * n * itemsize + 4),
        )(a2, p2)
        return res[0, 0]

    # ------------------- large tiled path: (rows, 128) lane-dense view -------
    pad = (-n) % _LANE
    a_flat = actual.reshape(-1)
    p_flat = pred.reshape(-1)
    if pad:
        # TODO(synk): rare ragged-lane case still pays one pad copy per input; a
        # lane mask on the final 128-chunk inside the kernel would avoid it.
        a_flat = jnp.concatenate([a_flat, jnp.zeros((pad,), a_flat.dtype)])
        p_flat = jnp.concatenate([p_flat, jnp.zeros((pad,), p_flat.dtype)])
    rows = (n + pad) // _LANE
    a2 = a_flat.reshape(rows, _LANE)
    p2 = p_flat.reshape(rows, _LANE)

    block_rows = _pick_block_rows(rows, itemsize)
    nblk = pl.cdiv(rows, block_rows)

    if reduction == "none":
        sq = pl.pallas_call(
            functools.partial(_sq_diff_tiled_kernel, block_rows=block_rows),
            out_shape=jax.ShapeDtypeStruct((rows, _LANE), out_dtype),
            grid_spec=pltpu.PrefetchScalarGridSpec(
                num_scalar_prefetch=0,
                grid=(nblk,),
                in_specs=[pl.BlockSpec((block_rows, _LANE), lambda i: (i, 0)),
                          pl.BlockSpec((block_rows, _LANE), lambda i: (i, 0))],
                out_specs=pl.BlockSpec((block_rows, _LANE), lambda i: (i, 0)),
            ),
            compiler_params=pltpu.CompilerParams(
                dimension_semantics=("parallel",),
                vmem_limit_bytes=_VMEM_LIMIT_BYTES),
            cost_estimate=pl.CostEstimate(
                flops=2 * n, transcendentals=0,
                bytes_accessed=2 * n * itemsize + n * jnp.dtype(out_dtype).itemsize),
        )(a2, p2)
        out = sq.reshape(-1)
        if pad:
            out = out[:n]
        return out.reshape(actual.shape)

    # reduction in ('mean', 'sum')
    split = 2 if nblk >= 2 else 1          # both TensorCores on v7x; sequential elsewhere
    bps = pl.cdiv(nblk, split)             # blocks per split (phantom blocks masked)

    def in_map(s, i):
        # Clamp phantom steps to a valid block so the DMA stays in-bounds;
        # the kernel masks their contribution to exactly zero.
        return (jnp.minimum(s * bps + i, nblk - 1), 0)

    partials = pl.pallas_call(
        functools.partial(_mse_sum_tiled_kernel, block_rows=block_rows,
                          total_rows=rows, blocks_per_split=bps),
        out_shape=jax.ShapeDtypeStruct((split * _SUBLANE, _LANE), jnp.float32),
        grid_spec=pltpu.PrefetchScalarGridSpec(
            num_scalar_prefetch=0,
            grid=(split, bps),
            in_specs=[pl.BlockSpec((block_rows, _LANE), in_map),
                      pl.BlockSpec((block_rows, _LANE), in_map)],
            out_specs=pl.BlockSpec((_SUBLANE, _LANE), lambda s, i: (s, 0)),
            scratch_shapes=[pltpu.VMEM((_SUBLANE, _LANE), jnp.float32)],
        ),
        compiler_params=pltpu.CompilerParams(
            dimension_semantics=("parallel", "arbitrary"),
            vmem_limit_bytes=_VMEM_LIMIT_BYTES),
        cost_estimate=pl.CostEstimate(
            flops=3 * n, transcendentals=0,
            bytes_accessed=2 * n * itemsize + split * _SUBLANE * _LANE * 4),
    )(a2, p2)

    total = jnp.sum(partials, dtype=jnp.float32)   # tiny final reduce (split*8*128)
    if reduction == "mean":
        return total / jnp.float32(n)
    return total


class GANLoss:
    """JAX/Pallas port of the PyTorch GANLoss module (forward pass only)."""

    def __init__(self, reduction="mean"):
        self.name = "GANLoss".title()
        self.reduction = reduction

    def __call__(self, actual, pred):
        if isinstance(actual, jax.Array) and isinstance(pred, jax.Array):
            return gan_loss(actual, pred, self.reduction)
        raise Exception("Unable to process the input".capitalize())


if __name__ == "__main__":
    key = jax.random.PRNGKey(0)
    k1, k2, k3, k4 = jax.random.split(key, 4)

    # Small, typical GANLoss shape (fast path: single block, SMEM scalar output).
    shape = (2, 4, 16, 16)
    actual = jax.random.normal(k1, shape, dtype=jnp.float32)
    pred = jax.random.normal(k2, shape, dtype=jnp.float32)

    loss_fn = GANLoss(reduction="mean")
    loss = jax.block_until_ready(loss_fn(actual, pred))
    ref_mean = jnp.mean((actual - pred) ** 2)
    assert jnp.allclose(loss, ref_mean, rtol=1e-5, atol=1e-6), (loss, ref_mean)

    loss_sum = jax.block_until_ready(gan_loss(actual, pred, reduction="sum"))
    ref_sum = jnp.sum((actual - pred) ** 2)
    assert jnp.allclose(loss_sum, ref_sum, rtol=1e-4, atol=1e-3), (loss_sum, ref_sum)

    loss_none = jax.block_until_ready(gan_loss(actual, pred, reduction="none"))
    ref_none = (actual - pred) ** 2
    assert jnp.allclose(loss_none, ref_none, rtol=1e-6, atol=1e-6)

    # Medium shape to exercise the tiled path: 2-way split, odd block count
    # (phantom block clamped + masked) and a ragged final block.
    shape_m = (10, 4, 250, 264)   # 2_640_000 elems -> rows=20625, 3 blocks of 8192
    actual_m = jax.random.normal(k3, shape_m, dtype=jnp.float32)
    pred_m = jax.random.normal(k4, shape_m, dtype=jnp.float32)
    loss_m = jax.block_until_ready(gan_loss(actual_m, pred_m, reduction="mean"))
    ref_m = jnp.mean((actual_m - pred_m) ** 2)
    assert jnp.allclose(loss_m, ref_m, rtol=1e-4, atol=1e-4), (loss_m, ref_m)

    print("KERNEL_OK")
</pallas_src>

<mosaic_0001>
module attributes {stable_mosaic.version = 11 : i64} {
  func.func @_mse_small_kernel(%arg0: memref<128x16xf32, #tpu.memory_space<vmem>>, %arg1: memref<128x16xf32, #tpu.memory_space<vmem>>, %arg2: memref<1x1xf32, #tpu.memory_space<smem>>) attributes {dimension_semantics = [], scalar_prefetch = 0 : i64, scratch_operands = 0 : i64, tpu.core_type = #tpu.core_type<tc>} {
    %c0 = arith.constant 0 : index
    %c0_0 = arith.constant 0 : index
    %0 = vector.load %arg0[%c0, %c0_0] : memref<128x16xf32, #tpu.memory_space<vmem>>, vector<128x16xf32>
    %c0_1 = arith.constant 0 : index
    %c0_2 = arith.constant 0 : index
    %1 = vector.load %arg1[%c0_1, %c0_2] : memref<128x16xf32, #tpu.memory_space<vmem>>, vector<128x16xf32>
    %2 = arith.subf %0, %1 : vector<128x16xf32>
    %3 = arith.mulf %2, %2 : vector<128x16xf32>
    %4 = vector.shape_cast %3 : vector<128x16xf32> to vector<1x128x16xf32>
    %cst = arith.constant dense<0.000000e+00> : vector<1xf32>
    %5 = vector.multi_reduction <add>, %4, %cst [1, 2] : vector<1x128x16xf32> to vector<1xf32>
    %6 = vector.shape_cast %5 : vector<1xf32> to vector<1x1x1xf32>
    %7 = vector.extract %6[0, 0, 0] : f32 from vector<1x1x1xf32>
    %cst_3 = arith.constant 2.048000e+03 : f32
    %8 = arith.divf %7, %cst_3 : f32
    %c0_4 = arith.constant 0 : index
    %c0_5 = arith.constant 0 : index
    %9 = memref.load %arg2[%c0_4, %c0_5] : memref<1x1xf32, #tpu.memory_space<smem>>
    memref.store %8, %arg2[%c0_4, %c0_5] : memref<1x1xf32, #tpu.memory_space<smem>>
    return
  }
}

</mosaic_0001>

<bundles_post_ra>
// kernel: tpu_custom_call.1
= control target key start
LH: loop header
LB: loop body
LE: loop exit
PB: predicated region body
PF: predicated region fallthrough
CT: control target
= control target key end

     0   :  { %s279_s0 = inlined_call_operand.vmem [shape: f32[128,16], index: 0, kind: input, shape index: {}]   ;;  %s280_s1 = inlined_call_operand.vmem [shape: f32[128,16], index: 1, kind: input, shape index: {}]   ;;  %s281_s2 = inlined_call_operand.hbm [shape: f32[1,1], index: 2, kind: output, shape index: {}]  }
   0x1   :  { %v12_v0 = vld [vmem:[%s279_s0] sm:$0xff]  ;;  %v13_v1 = vld [vmem:[%s279_s0 + $0x8] sm:$0xff]  ;;  %v14_v2 = vld [vmem:[%s279_s0 + $0x10] sm:$0xff] }
   0x2   :  { %v28_v3 = vld [vmem:[%s280_s1] sm:$0xff]  ;;  %v29_v4 = vld [vmem:[%s280_s1 + $0x8] sm:$0xff]  ;;  %v15_v5 = vld [vmem:[%s279_s0 + $0x18] sm:$0xff] }
   0x3   :  { %v30_v6 = vld [vmem:[%s280_s1 + $0x10] sm:$0xff]  ;;  %v31_v7 = vld [vmem:[%s280_s1 + $0x18] sm:$0xff]  ;;  %v44_v8 = vsub.f32 %v12_v0, %v28_v3  ;;  %v45_v9 = vsub.f32 %v13_v1, %v29_v4  ;;  %v16_v11 = vld [vmem:[%s279_s0 + $0x20] sm:$0xff] }
   0x4   :  { %v46_v10 = vsub.f32 %v14_v2, %v30_v6  ;;  %v32_v12 = vld [vmem:[%s280_s1 + $0x20] sm:$0xff]  ;;  %v47_v13 = vsub.f32 %v15_v5, %v31_v7  ;;  %v17_v14 = vld [vmem:[%s279_s0 + $0x28] sm:$0xff] }
   0x5   :  { %v33_v15 = vld [vmem:[%s280_s1 + $0x28] sm:$0xff]  ;;  %v60_v16 = vmul.f32 %v44_v8, %v44_v8 }
   0x6   :  { %7 = vsyncpa [#allocation3], 0  ;;  %v48_v17 = vsub.f32 %v16_v11, %v32_v12  ;;  %v61_v18 = vmul.f32 %v45_v9, %v45_v9  ;;  %v62_v19 = vmul.f32 %v46_v10, %v46_v10  ;;  %vm76_vm0 = vcmask 130048   ;;  %v18_v20 = vld [vmem:[%s279_s0 + $0x30] sm:$0xff]  ;;  %v19_v24 = vld [vmem:[%s279_s0 + $0x38] sm:$0xff]  ;;  %s148_s17 = smov [#allocation2]  }
   0x7   :  { %v34_v21 = vld [vmem:[%s280_s1 + $0x30] sm:$0xff]  ;;  %v49_v22 = vsub.f32 %v17_v14, %v33_v15  ;;  %v63_v23 = vmul.f32 %v47_v13, %v47_v13  ;;  %v35_v25 = vld [vmem:[%s280_s1 + $0x38] sm:$0xff]  ;;  %v77_v26 = vsel %vm76_vm0, %v60_v16, 0.0  ;;  %v20_v31 = vld [vmem:[%s279_s0 + $0x40] sm:$0xff] }
   0x8   :  { %v50_v27 = vsub.f32 %v18_v20, %v34_v21  ;;  %v64_v28 = vmul.f32 %v48_v17, %v48_v17  ;;  %v78_v29 = vsel %vm76_vm0, %v61_v18, 0.0  ;;  %v80_v30 = vsel %vm76_vm0, %v62_v19, 0.0  ;;  %v36_v32 = vld [vmem:[%s280_s1 + $0x40] sm:$0xff]  ;;  %v21_v37 = vld [vmem:[%s279_s0 + $0x48] sm:$0xff]  ;;  %v22_v43 = vld [vmem:[%s279_s0 + $0x50] sm:$0xff] }
   0x9   :  { %v79_v33 = vadd.f32 %v78_v29, %v77_v26  ;;  %v51_v34 = vsub.f32 %v19_v24, %v35_v25  ;;  %v65_v35 = vmul.f32 %v49_v22, %v49_v22  ;;  %v82_v36 = vsel %vm76_vm0, %v63_v23, 0.0  ;;  %v37_v38 = vld [vmem:[%s280_s1 + $0x48] sm:$0xff]  ;;  %v38_v44 = vld [vmem:[%s280_s1 + $0x50] sm:$0xff]  ;;  %v23_v49 = vld [vmem:[%s279_s0 + $0x58] sm:$0xff] }
   0xa   :  { %v52_v40 = vsub.f32 %v20_v31, %v36_v32  ;;  %v66_v41 = vmul.f32 %v50_v27, %v50_v27  ;;  %v84_v42 = vsel %vm76_vm0, %v64_v28, 0.0  ;;  %v53_v46 = vsub.f32 %v21_v37, %v37_v38  ;;  %v39_v50 = vld [vmem:[%s280_s1 + $0x58] sm:$0xff]  ;;  %v24_v55 = vld [vmem:[%s279_s0 + $0x60] sm:$0xff]  ;;  %v25_v61 = vld [vmem:[%s279_s0 + $0x68] sm:$0xff] }
   0xb   :  { %v81_v39 = vadd.f32 %v80_v30, %v79_v33  ;;  %v67_v47 = vmul.f32 %v51_v34, %v51_v34  ;;  %v86_v48 = vsel %vm76_vm0, %v65_v35, 0.0  ;;  %v54_v52 = vsub.f32 %v22_v43, %v38_v44  ;;  %v40_v56 = vld [vmem:[%s280_s1 + $0x60] sm:$0xff]  ;;  %v41_v62 = vld [vmem:[%s280_s1 + $0x68] sm:$0xff]  ;;  %v26_v3 = vld [vmem:[%s279_s0 + $0x70] sm:$0xff] }
   0xc   :  { %v68_v53 = vmul.f32 %v52_v40, %v52_v40  ;;  %v88_v54 = vsel %vm76_vm0, %v66_v41, 0.0  ;;  %v55_v58 = vsub.f32 %v23_v49, %v39_v50  ;;  %v69_v59 = vmul.f32 %v53_v46, %v53_v46  ;;  %v42_v4 = vld [vmem:[%s280_s1 + $0x70] sm:$0xff]  ;;  %v27_v9 = vld [vmem:[%s279_s0 + $0x78] sm:$0xff] }
   0xd   :  { %v83_v45 = vadd.f32 %v82_v36, %v81_v39  ;;  %v90_v60 = vsel %vm76_vm0, %v67_v47, 0.0  ;;  %v56_v0 = vsub.f32 %v24_v55, %v40_v56  ;;  %v70_v1 = vmul.f32 %v54_v52, %v54_v52  ;;  %v43_v10 = vld [vmem:[%s280_s1 + $0x78] sm:$0xff] }
   0xe   :  { %v92_v2 = vsel %vm76_vm0, %v68_v53, 0.0  ;;  %v57_v6 = vsub.f32 %v25_v61, %v41_v62  ;;  %v71_v7 = vmul.f32 %v55_v58, %v55_v58  ;;  %v94_v8 = vsel %vm76_vm0, %v69_v59, 0.0 }
   0xf   :  { %v85_v51 = vadd.f32 %v84_v42, %v83_v45  ;;  %v58_v12 = vsub.f32 %v26_v3, %v42_v4  ;;  %v72_v13 = vmul.f32 %v56_v0, %v56_v0  ;;  %v96_v14 = vsel %vm76_vm0, %v70_v1, 0.0 }
  0x10   :  { %v59_v16 = vsub.f32 %v27_v9, %v43_v10  ;;  %v73_v17 = vmul.f32 %v57_v6, %v57_v6  ;;  %v98_v18 = vsel %vm76_vm0, %v71_v7, 0.0 }
  0x11   :  { %v87_v57 = vadd.f32 %v86_v48, %v85_v51  ;;  %v74_v20 = vmul.f32 %v58_v12, %v58_v12  ;;  %v100_v21 = vsel %vm76_vm0, %v72_v13, 0.0 }
  0x12   :  { %v75_v23 = vmul.f32 %v59_v16, %v59_v16  ;;  %v102_v24 = vsel %vm76_vm0, %v73_v17, 0.0 }
  0x13   :  { %v89_v63 = vadd.f32 %v88_v54, %v87_v57  ;;  %v104_v26 = vsel %vm76_vm0, %v74_v20, 0.0 }
  0x14   :  { %v106_v28 = vsel %vm76_vm0, %v75_v23, 0.0 }
  0x15   :  { %v91_v5 = vadd.f32 %v90_v60, %v89_v63 }
  0x17   :  { %v93_v11 = vadd.f32 %v92_v2, %v91_v5 }
  0x19   :  { %v95_v15 = vadd.f32 %v94_v8, %v93_v11 }
  0x1b   :  { %v97_v19 = vadd.f32 %v96_v14, %v95_v15 }
  0x1d   :  { %v99_v22 = vadd.f32 %v98_v18, %v97_v19 }
  0x1f   :  { %v101_v25 = vadd.f32 %v100_v21, %v99_v22 }
  0x21   :  { %v103_v27 = vadd.f32 %v102_v24, %v101_v25 }
  0x23   :  { %v105_v29 = vadd.f32 %v104_v26, %v103_v27 }
  0x25   :  { %v107_v30 = vadd.f32 %v106_v28, %v105_v29 }
  0x27   :  { %108 = vadd.xlane.f32.xlu0 %v107_v30 }
  0xb0   :  { %v109_v31 = vpop.xlane.xlu0 %108 }
  0xb1   :  { %v110_v32 = vrot.slane %v109_v31, 4 }
  0xb3   :  { %v111_v33 = vadd.f32 %v110_v32, %v109_v31 }
  0xb5   :  { %v112_v34 = vrot.slane %v111_v33, 2 }
  0xb7   :  { %v113_v35 = vadd.f32 %v112_v34, %v111_v33 }
  0xb9   :  { %v114_v36 = vrot.slane %v113_v35, 1 }
  0xbb   :  { %v115_v37 = vadd.f32 %v114_v36, %v113_v35 }
  0xbd   :  { %135 = vpush %v115_v37 }
  0xee   :  { %s136_s0 = spop %135 }
  0xef   :  { %s119_s1 = smul.f32 0.00048828125, %s136_s0 }
  0xf1   :  { %121 = sst [smem:[#allocation2]] %s119_s1 }
  0xf2   :  { %129 = dma.smem_to_hbm %s148_s17, 16, %s281_s2, [#allocation3]  }
  0xf3   :  { %146 = dma.done.wait [#allocation3], 16  }
  0xf4   :  { %147 = vsyncadd [#allocation3], 4294967280 }
  0xf5   :  { %133 = sfence }
  0xf6   :  { %134 = vsyncpa [#allocation3], 1 }

</bundles_post_ra>
